<compile_context>
chip_gen: v7x
topology: tpu7x:2x2x1
jax: 0.10.0
libtpu: 0.0.40
codegen_flags: <defaults>
</compile_context>

<pallas_src>
import jax
import jax.numpy as jnp
from jax import lax
from jax.experimental import pallas as pl
from jax.experimental.pallas import tpu as pltpu


def _round_up(n: int, m: int) -> int:
    return ((n + m - 1) // m) * m


def _disc_kernel(x_ref, c_ref, w1x_ref, w1c_ref, b1_ref, w2_ref, b2_ref,
                 w3_ref, b3_ref, o_ref):
    # Layer 1: h1 = ReLU(x @ W1_x + cond @ W1_c + b1)   (feature concat fused)
    x = x_ref[...].astype(jnp.bfloat16)
    c = c_ref[...].astype(jnp.bfloat16)
    acc1 = (jnp.dot(x, w1x_ref[...], preferred_element_type=jnp.float32)
            + jnp.dot(c, w1c_ref[...], preferred_element_type=jnp.float32))
    b1 = b1_ref[...]
    # Epilogue (bias + ReLU) in the bias dtype: bf16 on v6e/v7x, f32 on v5e.
    h1 = jnp.maximum(acc1.astype(b1.dtype) + b1, 0.0).astype(jnp.bfloat16)

    # Layer 2: h2 = ReLU(h1 @ W2 + b2)
    acc2 = jnp.dot(h1, w2_ref[...], preferred_element_type=jnp.float32)
    b2 = b2_ref[...]
    h2 = jnp.maximum(acc2.astype(b2.dtype) + b2, 0.0).astype(jnp.bfloat16)

    # Layer 3 (64 -> 1): NT contraction (1,64) . (tile_b,64)^T -> (1, tile_b).
    # Result row is lane-dense, so the per-tile store is an unmasked vst.
    logits = lax.dot_general(
        w3_ref[...], h2,
        dimension_numbers=(((1,), (1,)), ((), ())),
        preferred_element_type=jnp.float32,
    ) + b3_ref[...]
    o_ref[...] = jax.nn.sigmoid(logits)


def discriminator_forward(x, cond, params, *, tile_b=4096,
                          epilogue_dtype=jnp.bfloat16,
                          vmem_limit_bytes=None):
    """x: (B, input_dim), cond: (B, cond_dim) -> (B, 1) float32.

    tile_b: batch tile (4096 fits the default 32 MiB scoped VMEM on all
    generations; on v5e/v6e go to 8192-16384 with vmem_limit_bytes=64<<20).
    epilogue_dtype: bf16 on v6e/v7x, float32 on v5e (no bf16 VPU path there).
    """
    w1, b1, w2, b2, w3, b3 = params
    B, input_dim = x.shape
    cond_dim = cond.shape[1]
    h1_dim = w1.shape[1]
    h2_dim = w2.shape[1]

    # Split W1 (fuses the concat) and pre-cast matmul weights to bf16.
    w1_x = w1[:input_dim].astype(jnp.bfloat16)
    w1_c = w1[input_dim:].astype(jnp.bfloat16)
    w2_b = w2.astype(jnp.bfloat16)
    w3_r = w3.reshape(1, h2_dim).astype(jnp.bfloat16)     # (64, 1) -> (1, 64)
    b1e = b1.reshape(1, h1_dim).astype(epilogue_dtype)
    b2e = b2.reshape(1, h2_dim).astype(epilogue_dtype)
    b3f = b3.reshape(1, 1).astype(jnp.float32)

    # Batch tiling WITHOUT padding the inputs: grid = cdiv(B, tile_b) and the
    # trailing partial block is handled by Pallas (masked output writes).
    if B <= 128:
        tile_b = B                       # single block == full array dims
    else:
        tile_b = _round_up(tile_b, 128)
        # v7x megacore balance: keep at least 2 tiles so both TCs get work.
        tile_b = max(128, min(tile_b, _round_up(pl.cdiv(B, 2), 128)))
    num_tiles = pl.cdiv(B, tile_b)

    def act_spec(d):
        return pl.BlockSpec((tile_b, d), lambda i: (i, 0))

    def res_spec(r, c):
        # Resident across grid iterations (constant block index => no re-DMA).
        return pl.BlockSpec((r, c), lambda i: (0, 0))

    flops = 2 * B * (input_dim * h1_dim + cond_dim * h1_dim
                     + h1_dim * h2_dim + h2_dim)
    bytes_accessed = (
        x.size * x.dtype.itemsize + cond.size * cond.dtype.itemsize + B * 4
        + (w1_x.size + w1_c.size + w2_b.size + w3_r.size) * 2
        + (b1e.size + b2e.size) * b1e.dtype.itemsize + b3f.size * 4)

    cp_kwargs = dict(dimension_semantics=("parallel",))
    if vmem_limit_bytes is not None:
        cp_kwargs["vmem_limit_bytes"] = vmem_limit_bytes

    out = pl.pallas_call(
        _disc_kernel,
        grid=(num_tiles,),
        in_specs=[
            act_spec(input_dim),                 # x tile
            act_spec(cond_dim),                  # cond tile
            res_spec(input_dim, h1_dim),         # W1_x
            res_spec(cond_dim, h1_dim),          # W1_c
            res_spec(1, h1_dim),                 # b1
            res_spec(h1_dim, h2_dim),            # W2
            res_spec(1, h2_dim),                 # b2
            res_spec(1, h2_dim),                 # W3 (stored as a row)
            res_spec(1, 1),                      # b3
        ],
        out_specs=pl.BlockSpec((1, tile_b), lambda i: (0, i)),
        out_shape=jax.ShapeDtypeStruct((1, B), jnp.float32),
        compiler_params=pltpu.CompilerParams(**cp_kwargs),
        cost_estimate=pl.CostEstimate(
            flops=flops, transcendentals=2 * B,
            bytes_accessed=bytes_accessed),
    )(x, cond, w1_x, w1_c, b1e, w2_b, b2e, w3_r, b3f)

    # Layout plumbing only: (1, B) row -> (B, 1) column.
    return out.reshape(B, 1)


def init_params(key, input_dim, cond_dim):
    """Synthetic parameters matching the PyTorch module shapes.

    PyTorch Linear(in, out) stores weight (out, in); we store (in, out) so the
    kernel computes x @ W + b (equivalent to x @ W_pt.T + b).
    """
    d_in = input_dim + cond_dim
    k1, k2, k3, k4, k5, k6 = jax.random.split(key, 6)
    w1 = jax.random.normal(k1, (d_in, 128), jnp.float32) * 0.05
    b1 = jax.random.normal(k2, (1, 128), jnp.float32) * 0.05
    w2 = jax.random.normal(k3, (128, 64), jnp.float32) * 0.05
    b2 = jax.random.normal(k4, (1, 64), jnp.float32) * 0.05
    w3 = jax.random.normal(k5, (64, 1), jnp.float32) * 0.05
    b3 = jax.random.normal(k6, (1, 1), jnp.float32) * 0.05
    return (w1, b1, w2, b2, w3, b3)


if __name__ == "__main__":
    key = jax.random.PRNGKey(0)
    # Small demo shapes; batch=250 exercises the multi-tile grid (tile_b is
    # clamped to 128 for two-core balance) plus the un-padded partial edge
    # block (250 = 128 + 122).
    batch, input_dim, cond_dim = 250, 16, 8

    kx, kc, kp = jax.random.split(key, 3)
    x = jax.random.normal(kx, (batch, input_dim), jnp.float32)
    cond = jax.random.normal(kc, (batch, cond_dim), jnp.float32)
    params = init_params(kp, input_dim, cond_dim)

    out = discriminator_forward(x, cond, params)
    jax.block_until_ready(out)

    # Pure-JAX f32 reference (kernel uses bf16 matmul operands with f32
    # accumulation and a bf16 epilogue, so compare with a loose tolerance).
    xc = jnp.concatenate([x, cond], axis=1)
    w1, b1, w2, b2, w3, b3 = params
    h = jnp.maximum(xc @ w1 + b1, 0.0)
    h = jnp.maximum(h @ w2 + b2, 0.0)
    ref = jax.nn.sigmoid(h @ w3 + b3)

    assert out.shape == (batch, 1)
    assert jnp.allclose(out, ref, atol=1e-2, rtol=0.0), (
        float(jnp.max(jnp.abs(out - ref))))

    print("KERNEL_OK")
</pallas_src>

<mosaic_0001>
module attributes {stable_mosaic.version = 11 : i64} {
  func.func @_disc_kernel(%arg0: i32, %arg1: memref<128x16xf32, #tpu.memory_space<vmem>>, %arg2: memref<128x8xf32, #tpu.memory_space<vmem>>, %arg3: memref<16x128xbf16, #tpu.memory_space<vmem>>, %arg4: memref<8x128xbf16, #tpu.memory_space<vmem>>, %arg5: memref<1x128xbf16, #tpu.memory_space<vmem>>, %arg6: memref<128x64xbf16, #tpu.memory_space<vmem>>, %arg7: memref<1x64xbf16, #tpu.memory_space<vmem>>, %arg8: memref<1x64xbf16, #tpu.memory_space<vmem>>, %arg9: memref<1x1xf32, #tpu.memory_space<vmem>>, %arg10: memref<1x128xf32, #tpu.memory_space<vmem>>) attributes {dimension_semantics = [#tpu.dimension_semantics<parallel>], iteration_bounds = array<i64: 2>, scalar_prefetch = 0 : i64, scratch_operands = 0 : i64, tpu.core_type = #tpu.core_type<tc>, window_params = [{transform_indices = @transform_0, window_bounds = array<i64: 128, 16>}, {transform_indices = @transform_1, window_bounds = array<i64: 128, 8>}, {pipeline_mode = #tpu.pipeline_mode<synchronous>, transform_indices = @transform_2, window_bounds = array<i64: 16, 128>}, {pipeline_mode = #tpu.pipeline_mode<synchronous>, transform_indices = @transform_3, window_bounds = array<i64: 8, 128>}, {pipeline_mode = #tpu.pipeline_mode<synchronous>, transform_indices = @transform_4, window_bounds = array<i64: 1, 128>}, {pipeline_mode = #tpu.pipeline_mode<synchronous>, transform_indices = @transform_5, window_bounds = array<i64: 128, 64>}, {pipeline_mode = #tpu.pipeline_mode<synchronous>, transform_indices = @transform_6, window_bounds = array<i64: 1, 64>}, {pipeline_mode = #tpu.pipeline_mode<synchronous>, transform_indices = @transform_7, window_bounds = array<i64: 1, 64>}, {pipeline_mode = #tpu.pipeline_mode<synchronous>, transform_indices = @transform_8, window_bounds = array<i64: 1, 1>}, {transform_indices = @transform_9, window_bounds = array<i64: 1, 128>}]} {
    %c0 = arith.constant 0 : index
    %c0_0 = arith.constant 0 : index
    %0 = vector.load %arg1[%c0, %c0_0] : memref<128x16xf32, #tpu.memory_space<vmem>>, vector<128x16xf32>
    %1 = arith.truncf %0 : vector<128x16xf32> to vector<128x16xbf16>
    %c0_1 = arith.constant 0 : index
    %c0_2 = arith.constant 0 : index
    %2 = vector.load %arg2[%c0_1, %c0_2] : memref<128x8xf32, #tpu.memory_space<vmem>>, vector<128x8xf32>
    %3 = arith.truncf %2 : vector<128x8xf32> to vector<128x8xbf16>
    %c0_3 = arith.constant 0 : index
    %c0_4 = arith.constant 0 : index
    %4 = vector.load %arg3[%c0_3, %c0_4] : memref<16x128xbf16, #tpu.memory_space<vmem>>, vector<16x128xbf16>
    %cst = arith.constant dense<0.000000e+00> : vector<128x128xf32>
    %5 = tpu.matmul %1, %4, %cst {dimension_numbers = #tpu.dot_dimension_numbers<[1], [0], [0], [1], [0, 0, 1, 1], [], []>} : vector<128x16xbf16>, vector<16x128xbf16>, vector<128x128xf32> -> vector<128x128xf32>
    %c0_5 = arith.constant 0 : index
    %c0_6 = arith.constant 0 : index
    %6 = vector.load %arg4[%c0_5, %c0_6] : memref<8x128xbf16, #tpu.memory_space<vmem>>, vector<8x128xbf16>
    %cst_7 = arith.constant dense<0.000000e+00> : vector<128x128xf32>
    %7 = tpu.matmul %3, %6, %cst_7 {dimension_numbers = #tpu.dot_dimension_numbers<[1], [0], [0], [1], [0, 0, 1, 1], [], []>} : vector<128x8xbf16>, vector<8x128xbf16>, vector<128x128xf32> -> vector<128x128xf32>
    %8 = arith.addf %5, %7 : vector<128x128xf32>
    %c0_8 = arith.constant 0 : index
    %c0_9 = arith.constant 0 : index
    %9 = vector.load %arg5[%c0_8, %c0_9] : memref<1x128xbf16, #tpu.memory_space<vmem>>, vector<1x128xbf16>
    %10 = arith.truncf %8 : vector<128x128xf32> to vector<128x128xbf16>
    %11 = vector.broadcast %9 : vector<1x128xbf16> to vector<128x128xbf16>
    %12 = arith.addf %10, %11 : vector<128x128xbf16>
    %cst_10 = arith.constant 0.000000e+00 : bf16
    %13 = vector.broadcast %cst_10 : bf16 to vector<128x128xbf16>
    %14 = arith.maximumf %12, %13 : vector<128x128xbf16>
    %c0_11 = arith.constant 0 : index
    %c0_12 = arith.constant 0 : index
    %15 = vector.load %arg6[%c0_11, %c0_12] : memref<128x64xbf16, #tpu.memory_space<vmem>>, vector<128x64xbf16>
    %cst_13 = arith.constant dense<0.000000e+00> : vector<128x64xf32>
    %16 = tpu.matmul %14, %15, %cst_13 {dimension_numbers = #tpu.dot_dimension_numbers<[1], [0], [0], [1], [0, 0, 1, 1], [], []>} : vector<128x128xbf16>, vector<128x64xbf16>, vector<128x64xf32> -> vector<128x64xf32>
    %c0_14 = arith.constant 0 : index
    %c0_15 = arith.constant 0 : index
    %17 = vector.load %arg7[%c0_14, %c0_15] : memref<1x64xbf16, #tpu.memory_space<vmem>>, vector<1x64xbf16>
    %18 = arith.truncf %16 : vector<128x64xf32> to vector<128x64xbf16>
    %19 = vector.broadcast %17 : vector<1x64xbf16> to vector<128x64xbf16>
    %20 = arith.addf %18, %19 : vector<128x64xbf16>
    %cst_16 = arith.constant 0.000000e+00 : bf16
    %21 = vector.broadcast %cst_16 : bf16 to vector<128x64xbf16>
    %22 = arith.maximumf %20, %21 : vector<128x64xbf16>
    %c0_17 = arith.constant 0 : index
    %c0_18 = arith.constant 0 : index
    %23 = vector.load %arg8[%c0_17, %c0_18] : memref<1x64xbf16, #tpu.memory_space<vmem>>, vector<1x64xbf16>
    %cst_19 = arith.constant dense<0.000000e+00> : vector<1x128xf32>
    %24 = tpu.matmul %23, %22, %cst_19 {dimension_numbers = #tpu.dot_dimension_numbers<[1], [1], [0], [0], [0, 0, 1, 0], [], []>} : vector<1x64xbf16>, vector<128x64xbf16>, vector<1x128xf32> -> vector<1x128xf32>
    %c0_20 = arith.constant 0 : index
    %c0_21 = arith.constant 0 : index
    %25 = vector.load %arg9[%c0_20, %c0_21] : memref<1x1xf32, #tpu.memory_space<vmem>>, vector<1x1xf32>
    %26 = vector.broadcast %25 : vector<1x1xf32> to vector<1x128xf32>
    %27 = arith.addf %24, %26 : vector<1x128xf32>
    %28 = arith.negf %27 : vector<1x128xf32>
    %29 = math.exp %28 : vector<1x128xf32>
    %cst_22 = arith.constant 1.000000e+00 : f32
    %30 = vector.broadcast %cst_22 : f32 to vector<1x128xf32>
    %31 = arith.addf %30, %29 : vector<1x128xf32>
    %32 = arith.divf %30, %31 : vector<1x128xf32>
    %c0_23 = arith.constant 0 : index
    %c0_24 = arith.constant 0 : index
    %33 = vector.load %arg10[%c0_23, %c0_24] : memref<1x128xf32, #tpu.memory_space<vmem>>, vector<1x128xf32>
    tpu.vector_store %arg10[%c0_23, %c0_24], %32 {strides = array<i32>} : memref<1x128xf32, #tpu.memory_space<vmem>>, vector<1x128xf32>,
    return
  }
  func.func @transform_0(%arg0: i32) -> (i32, i32) {
    %c0_i32 = arith.constant 0 : i32
    %c0_i32_0 = arith.constant 0 : i32
    return %arg0, %c0_i32 : i32, i32
  }
  func.func @transform_1(%arg0: i32) -> (i32, i32) {
    %c0_i32 = arith.constant 0 : i32
    %c0_i32_0 = arith.constant 0 : i32
    return %arg0, %c0_i32 : i32, i32
  }
  func.func @transform_2(%arg0: i32) -> (i32, i32) {
    %c0_i32 = arith.constant 0 : i32
    %c0_i32_0 = arith.constant 0 : i32
    %c0_i32_1 = arith.constant 0 : i32
    return %c0_i32, %c0_i32_0 : i32, i32
  }
  func.func @transform_3(%arg0: i32) -> (i32, i32) {
    %c0_i32 = arith.constant 0 : i32
    %c0_i32_0 = arith.constant 0 : i32
    %c0_i32_1 = arith.constant 0 : i32
    return %c0_i32, %c0_i32_0 : i32, i32
  }
  func.func @transform_4(%arg0: i32) -> (i32, i32) {
    %c0_i32 = arith.constant 0 : i32
    %c0_i32_0 = arith.constant 0 : i32
    %c0_i32_1 = arith.constant 0 : i32
    return %c0_i32, %c0_i32_0 : i32, i32
  }
  func.func @transform_5(%arg0: i32) -> (i32, i32) {
    %c0_i32 = arith.constant 0 : i32
    %c0_i32_0 = arith.constant 0 : i32
    %c0_i32_1 = arith.constant 0 : i32
    return %c0_i32, %c0_i32_0 : i32, i32
  }
  func.func @transform_6(%arg0: i32) -> (i32, i32) {
    %c0_i32 = arith.constant 0 : i32
    %c0_i32_0 = arith.constant 0 : i32
    %c0_i32_1 = arith.constant 0 : i32
    return %c0_i32, %c0_i32_0 : i32, i32
  }
  func.func @transform_7(%arg0: i32) -> (i32, i32) {
    %c0_i32 = arith.constant 0 : i32
    %c0_i32_0 = arith.constant 0 : i32
    %c0_i32_1 = arith.constant 0 : i32
    return %c0_i32, %c0_i32_0 : i32, i32
  }
  func.func @transform_8(%arg0: i32) -> (i32, i32) {
    %c0_i32 = arith.constant 0 : i32
    %c0_i32_0 = arith.constant 0 : i32
    %c0_i32_1 = arith.constant 0 : i32
    return %c0_i32, %c0_i32_0 : i32, i32
  }
  func.func @transform_9(%arg0: i32) -> (i32, i32) {
    %c0_i32 = arith.constant 0 : i32
    %c0_i32_0 = arith.constant 0 : i32
    return %c0_i32, %arg0 : i32, i32
  }
}

</mosaic_0001>

<bundles_post_ra>
// kernel: tpu_custom_call.1
= control target key start
LH: loop header
LB: loop body
LE: loop exit
PB: predicated region body
PF: predicated region fallthrough
CT: control target
= control target key end

     0   :  { %s1659_s0 = inlined_call_operand.vmem [shape: f32[250,16], index: 0, kind: input, shape index: {}]   ;;  %s1660_s1 = inlined_call_operand.vmem [shape: f32[250,8], index: 1, kind: input, shape index: {}]   ;;  %s1661_s2 = inlined_call_operand.vmem [shape: bf16[16,128], index: 2, kind: input, shape index: {}]   ;;  %s1662_s3 = inlined_call_operand.vmem [shape: bf16[8,128], index: 3, kind: input, shape index: {}]   ;;  %s1663_s4 = inlined_call_operand.vmem [shape: bf16[1,128], index: 4, kind: input, shape index: {}]   ;;  %s1664_s5 = inlined_call_operand.vmem [shape: bf16[128,64], index: 5, kind: input, shape index: {}]   ;;  %s1665_s6 = inlined_call_operand.vmem [shape: bf16[1,64], index: 6, kind: input, shape index: {}]   ;;  %s1666_s7 = inlined_call_operand.vmem [shape: bf16[1,64], index: 7, kind: input, shape index: {}]   ;;  %s1667_s8 = inlined_call_operand.<no memory space> [shape: f32[1,1], index: 8, kind: input, shape index: {}]   ;;  %s1668_s9 = inlined_call_operand.hbm [shape: f32[1,250], index: 9, kind: output, shape index: {}]  }
   0x1   :  { %v14_v0 = vstv %s1667_s8 }
   0x2   :  { %15 = vst [vmem:[#allocation2] sm:$0x1] %v14_v0 }
   0x3   :  { %16 = vsyncpa [#allocation4], 0 }
   0x4   :  { %18 = vsyncpa [#allocation4 + $0x1], 0  ;;  %s1416_s11 = smov 0   ;;  %s1418_s12 = smov 0  }
   0x5   :  { %s1420_s13 = smov 0   ;;  %s1422_s14 = smov 0  }
   0x6 LB: > { %s1052_s8 = sadd.s32 4294967295, %s1357_s14   ;;  %s1053_s15 = sadd.s32 4294967294, %s1357_s14   ;;  %s1357_s14 = sphi %s1422_s14, %s1674_s14   ;;  %s1353_s13 = sphi %s1420_s13, %s1673_s13   ;;  %s1349_s12 = sphi %s1418_s12, %s1672_s12   ;;  %s1345_s11 = sphi %s1416_s11, %s1671_s11  }
   0x7   : > { %s1439_s16 = sadd.s32 1, %s1357_s14   ;;  %s230_s17 = sadd.s32 1, %s1353_s13 }
   0x8   : > { %s227_s18 = ssub.s32 %s1357_s14, %s1439_s16  ;;  %p240_p0 = scmp.ne.s32.totalorder %s1353_s13, %s1349_s12 }
   0x9   : > { %p228_p1 = scmp.eq.s32.totalorder %s227_s18, 0  ;;  %p241_p2 = scmp.eq.s32.totalorder %s1052_s8, 1 }
   0xa   : > { %p246_p3 = scmp.ne.s32.totalorder %s1349_s12, %s1345_s11  ;;  %p247_p4 = scmp.eq.s32.totalorder %s1053_s15, 1 }
   0xb   : > { %s1449_s19 = scalar_select %p228_p1, %s1353_s13, %s230_s17  }
   0xc   : > { %p1451_p5 = por %p241_p2, %p240_p0  ;;  %p1455_p6 = por %p247_p4, %p246_p3 }
   0xd   : > { %p1056_p7 = scmp.ge.s32.totalorder %s1357_s14, 1  ;;  %p304_p8 = scmp.lt.s32.totalorder %s1357_s14, 3 }
   0xf   : > { %p305_p9 = pnand %p1056_p7, %p304_p8 }
  0x10   : > { %v407_v1 = vld [vmem:[%s1662_s3] sm:$0xf] (!%p305_p9)  ;;  %vm433_vm0 = vcmask (!%p305_p9), 1043456   ;;  %s1467_s26 = sshll.u32 (!%p305_p9), %s1052_s8, 4  ;;  %vm408_vm1 = vcmask (!%p305_p9), 64512   ;;  %vm540_vm2 = vcmask (!%p305_p9), 130048   ;;  %v674_v61 = vlaneseq (!%p305_p9) }
  0x11   : > { %308 = sbr.rel (%p305_p9) target bundleno = 796 (0x31c), region = 56  ;;  %v1282_v2 = vld [vmem:[%s1661_s2] sm:$0xff] (!%p305_p9)   ;;  %1238 = vmatprep.subr.msk.bf16.mxu1 (!%p305_p9), %vm433_vm0, %v407_v1  ;;  %v435_v3 = vsel (!%p305_p9), %vm433_vm0, %v407_v1, 0  ;;  %p345_p10 = scmp.lt.s32.totalorder (!%p305_p9), %s1467_s26, 31  ;;  %v1284_v23 = vld [vmem:[%s1664_s5 + $0x8] sm:$0xff] (!%p305_p9)   ;;  %v1285_v33 = vld [vmem:[%s1664_s5 + $0x10] sm:$0xff] (!%p305_p9)  }
  0x12   : > { %1152 = vmatprep.subr.bf16.mxu0 (!%p305_p9), %v1282_v2  ;;  %1135 = vmatpush3.bf16.msra.mxu1 (!%p305_p9), %v435_v3  ;;  %v1283_v4 = vld [vmem:[%s1664_s5] sm:$0xff] (!%p305_p9)   ;;  %v1286_v37 = vld [vmem:[%s1664_s5 + $0x18] sm:$0xff] (!%p305_p9)   ;;  %v1288_v57 = vld [vmem:[%s1664_s5 + $0x28] sm:$0xff] (!%p305_p9)   ;;  %v1359_v60 = vmov (!%p305_p9), 0   ;;  %v675_v62 = vshrl.u32 (!%p305_p9), %v674_v61, 7  ;;  %vm1361_vm3 = vmmov (!%p305_p9), 0  }
  0x13   : > { %1153 = vmatpush3.bf16.msra.mxu0 (!%p305_p9), %v1282_v2  ;;  %v1287_v47 = vld [vmem:[%s1664_s5 + $0x20] sm:$0xff] (!%p305_p9)   ;;  %v1289_v58 = vld [vmem:[%s1664_s5 + $0x30] sm:$0xff] (!%p305_p9)   ;;  %v1290_v59 = vld [vmem:[%s1664_s5 + $0x38] sm:$0xff] (!%p305_p9)   ;;  %1281 = vset.pattern.permute.xlu0 (!%p305_p9), %v1359_v60  ;;  %vm898_vm4 = vcmask (!%p305_p9), 523264   ;;  %s342_s10 = sand.u32 (!%p305_p9), 1, %s1349_s12   ;;  %s1362_s25 = smov (!%p305_p9), [#allocation3]  }
  0x14   : > { %1170 = vmatprep.subr.bf16.mxu0 (!%p305_p9), %v1283_v4  ;;  %v662_v63 = vld [vmem:[%s1663_s4] sm:$0x1] (!%p305_p9)  ;;  %v1557_v2 = vsub.s32 (!%p305_p9), 0, %v675_v62  ;;  %s343_s15 = scalar_lea.vmem (!%p305_p9), [#allocation3], %s342_s10  ;;  %s1299_s27 = sshll.u32 (!%p305_p9), %s1362_s25, 4  ;;  %s1300_s27 = int_to_ptr.vmem [resolvable:$false] %s1299_s27 }
  0x15   : > { %v672_v1 = vpack.i.b16 (!%p305_p9), %v662_v63, %v662_v63  ;;  %s986_s8 = sshll.u32 (!%p305_p9), %s343_s15, 4  ;;  %s1301_s28 = scalar_lea.vmem (!%p305_p9), %s1300_s27, 32  ;;  %s1619_s8 = int_to_ptr.vmem [resolvable:$true] %s986_s8 }
  0x16   : > { %s1295_s24 = scalar_lea.vmem (!%p305_p9), %s1619_s8, 16  ;;  %p1302_p0 = scmp.lt.s32.totalorder (!%p305_p9), %s1619_s8, %s1300_s27 }
  0x17   : > { %p1296_p11 = scmp.ne.s32.totalorder (!%p305_p9), %s1619_s8, %s1295_s24  ;;  %p1303_p1 = scmp.lt.s32.totalorder (!%p305_p9), %s1301_s28, %s1295_s24 }
  0x18   : > { %s346_s29 = scalar_select %p345_p10, %s1467_s26, 31 }
  0x19   : > { %p1297_p12 = pnand %p1296_p11, %p1451_p5  ;;  %p1304_p2 = por %p1303_p1, %p1302_p0 }
  0x1a   : > { %s1058_s30 = sshll.u32 %s346_s29, 3 }
  0x1b   : > { %s1477_s17 = scalar_lea.vmem %s1660_s1, %s1058_s30  ;;  %s1482_s22 = scalar_lea.vmem %s1659_s0, %s1058_s30 }
  0x1c   : > { %v381_v5 = vld [vmem:[%s1477_s17] sm:$0xff]  ;;  %v382_v6 = vld [vmem:[%s1477_s17 + $0x8] sm:$0xff]  ;;  %v383_v10 = vld [vmem:[%s1477_s17 + $0x10] sm:$0xff]  ;;  %p1298_p13 = pneg %p1297_p12 }
  0x1d   : > { %v357_v7 = vld [vmem:[%s1482_s22] sm:$0xff]  ;;  %v397_v8 = vpack.c.bf16 %v382_v6, %v381_v5  ;;  %v358_v9 = vld [vmem:[%s1482_s22 + $0x8] sm:$0xff]  ;;  %v384_v11 = vld [vmem:[%s1477_s17 + $0x18] sm:$0xff] }
  0x1e   : > { %v373_v12 = vpack.c.bf16 %v358_v9, %v357_v7  ;;  %v398_v13 = vpack.c.bf16 %v384_v11, %v383_v10  ;;  %v359_v14 = vld [vmem:[%s1482_s22 + $0x10] sm:$0xff]  ;;  %v360_v15 = vld [vmem:[%s1482_s22 + $0x18] sm:$0xff]  ;;  %v385_v16 = vld [vmem:[%s1477_s17 + $0x20] sm:$0xff]  ;;  %p1305_p3 = pnand %p1304_p2, %p1298_p13 }
  0x1f   : > { %1136 = vmatprep.mubr.msk.bf16.mxu1 %vm408_vm1, %v397_v8  ;;  %v374_v17 = vpack.c.bf16 %v360_v15, %v359_v14  ;;  %v386_v18 = vld [vmem:[%s1477_s17 + $0x28] sm:$0xff]  ;;  %v361_v19 = vld [vmem:[%s1482_s22 + $0x20] sm:$0xff]  ;;  %v387_v24 = vld [vmem:[%s1477_s17 + $0x30] sm:$0xff] }
  0x20   : > { %v362_v20 = vld [vmem:[%s1482_s22 + $0x28] sm:$0xff]  ;;  %1154 = vmatprep.mubr.msk.bf16.mxu0 %vm540_vm2, %v373_v12  ;;  %1137 = vmatmul.mubr.msk.bf16.vlgmr.msra.gmra.mrb[0].mxu1 %vm408_vm1, %v398_v13  ;;  %v399_v21 = vpack.c.bf16 %v386_v18, %v385_v16  ;;  %v388_v25 = vld [vmem:[%s1477_s17 + $0x38] sm:$0xff]  ;;  %v363_v26 = vld [vmem:[%s1482_s22 + $0x30] sm:$0xff]  ;;  %v1560_v12 = vrot.slane %v672_v1, %v1557_v2 }
  0x21   : > { %v375_v22 = vpack.c.bf16 %v362_v20, %v361_v19  ;;  %1155 = vmatmul.mubr.msk.bf16.vlgmr.msra.gmra.mrb[0].mxu0 %vm540_vm2, %v374_v17  ;;  %v364_v27 = vld [vmem:[%s1482_s22 + $0x38] sm:$0xff]  ;;  %v389_v28 = vld [vmem:[%s1477_s17 + $0x40] sm:$0xff]  ;;  %v390_v29 = vld [vmem:[%s1477_s17 + $0x48] sm:$0xff]  ;;  %v400_v32 = vpack.c.bf16 %v388_v25, %v387_v24 }
  0x22   : > { %1140 = vmatprep.mubr.msk.bf16.mxu1 %vm408_vm1, %v399_v21  ;;  %v365_v30 = vld [vmem:[%s1482_s22 + $0x40] sm:$0xff]  ;;  %v366_v31 = vld [vmem:[%s1482_s22 + $0x48] sm:$0xff]  ;;  %1171 = vmatpush3.bf16.msra.mxu0 %v1283_v4  ;;  %v376_v34 = vpack.c.bf16 %v364_v27, %v363_v26  ;;  %v401_v35 = vpack.c.bf16 %v390_v29, %v389_v28  ;;  %v391_v38 = vld [vmem:[%s1477_s17 + $0x50] sm:$0xff] }
  0x23   : > { %1158 = vmatprep.mubr.msk.bf16.mxu0 %vm540_vm2, %v375_v22  ;;  %1172 = vmatprep.subr.bf16.mxu0 %v1284_v23  ;;  %v377_v36 = vpack.c.bf16 %v366_v31, %v365_v30  ;;  %v392_v39 = vld [vmem:[%s1477_s17 + $0x58] sm:$0xff]  ;;  %v367_v40 = vld [vmem:[%s1482_s22 + $0x50] sm:$0xff]  ;;  %v393_v42 = vld [vmem:[%s1477_s17 + $0x60] sm:$0xff] }
  0x24   : > { %v368_v41 = vld [vmem:[%s1482_s22 + $0x58] sm:$0xff]  ;;  %v394_v43 = vld [vmem:[%s1477_s17 + $0x68] sm:$0xff]  ;;  %v369_v44 = vld [vmem:[%s1482_s22 + $0x60] sm:$0xff]  ;;  %v402_v46 = vpack.c.bf16 %v392_v39, %v391_v38 }
  0x25   : > { %v370_v45 = vld [vmem:[%s1482_s22 + $0x68] sm:$0xff]  ;;  %v378_v48 = vpack.c.bf16 %v368_v41, %v367_v40  ;;  %v403_v49 = vpack.c.bf16 %v394_v43, %v393_v42  ;;  %v395_v51 = vld [vmem:[%s1477_s17 + $0x70] sm:$0xff]  ;;  %v396_v52 = vld [vmem:[%s1477_s17 + $0x78] sm:$0xff]  ;;  %s1617_s17 = scalar_lea.hbm %s1668_s9, %s1467_s26 }
  0x26   : > { %1173 = vmatpush3.bf16.msra.mxu0 %v1284_v23  ;;  %v379_v50 = vpack.c.bf16 %v370_v45, %v369_v44  ;;  %v371_v53 = vld [vmem:[%s1482_s22 + $0x70] sm:$0xff]  ;;  %v372_v54 = vld [vmem:[%s1482_s22 + $0x78] sm:$0xff]  ;;  %v404_v55 = vpack.c.bf16 %v396_v52, %v395_v51  ;;  %s974_s22 = scalar_lea.sflag [#allocation4], %s342_s10 }
  0x27   : > { %1174 = vmatprep.subr.bf16.mxu0 %v1285_v33  ;;  %v380_v56 = vpack.c.bf16 %v372_v54, %v371_v53 }
  0x28   : > { %1141 = vmatmul.mubr.msk.bf16.gmra.mrb[4].mxu1 %vm408_vm1, %v400_v32 }
  0x29   : > { %1159 = vmatmul.mubr.msk.bf16.gmra.mrb[4].mxu0 %vm540_vm2, %v376_v34  ;;  %1144 = vmatprep.mubr.msk.bf16.mxu1 %vm408_vm1, %v401_v35 }
  0x2a   : > { %1162 = vmatprep.mubr.msk.bf16.mxu0 %vm540_vm2, %v377_v36  ;;  %1175 = vmatpush3.bf16.msra.mxu0 %v1285_v33 }
  0x2b   : > { %1176 = vmatprep.subr.bf16.mxu0 %v1286_v37 }
  0x2e   : > { %1177 = vmatpush3.bf16.msra.mxu0 %v1286_v37 }
  0x2f   : > { %1178 = vmatprep.subr.bf16.mxu0 %v1287_v47 }
  0x30   : > { %1145 = vmatmul.mubr.msk.bf16.gmra.mrb[8].mxu1 %vm408_vm1, %v402_v46 }
  0x31   : > { %1163 = vmatmul.mubr.msk.bf16.gmra.mrb[8].mxu0 %vm540_vm2, %v378_v48  ;;  %1148 = vmatprep.mubr.msk.bf16.mxu1 %vm408_vm1, %v403_v49 }
  0x32   : > { %1166 = vmatprep.mubr.msk.bf16.mxu0 %vm540_vm2, %v379_v50  ;;  %1179 = vmatpush3.bf16.msra.mxu0 %v1287_v47 }
  0x33   : > { %1180 = vmatprep.subr.bf16.mxu0 %v1288_v57 }
  0x36   : > { %1181 = vmatpush3.bf16.msra.mxu0 %v1288_v57 }
  0x37   : > { %1182 = vmatprep.subr.bf16.mxu0 %v1289_v58 }
  0x38   : > { %1149 = vmatmul.mubr.msk.bf16.gmra.mrb[12].mxu1 %vm408_vm1, %v404_v55 }
  0x39   : > { %1167 = vmatmul.mubr.msk.bf16.gmra.mrb[12].mxu0 %vm540_vm2, %v380_v56 }
  0x3a   : > { %1183 = vmatpush3.bf16.msra.mxu0 %v1289_v58 }
  0x3b   : > { %1184 = vmatprep.subr.bf16.mxu0 %v1290_v59 }
  0x3e   : > { %1185 = vmatpush3.bf16.msra.mxu0 %v1290_v59 }
  0xf3   : > { %v1138_v0 = vpop.f32.mrb[0].mxu1 }
  0xf4   : > { %v1156_v3 = vpop.f32.mrb[0].mxu0  ;;  %v471_v4 = vpop.f32.mrb[1].mxu1 }
  0xf5   : > { %v608_v5 = vadd.f32 %v1156_v3, %v1138_v0  ;;  %v599_v6 = vpop.f32.mrb[1].mxu0  ;;  %v1139_v7 = vpop.f32.mrb[2].mxu1 }
  0xf6   : > { %v600_v8 = vadd.f32 %v599_v6, %v471_v4  ;;  %v1157_v9 = vpop.f32.mrb[2].mxu0  ;;  %v474_v10 = vpop.f32.mrb[3].mxu1 }
  0xf7   : > { %v611_v11 = vadd.f32 %v1157_v9, %v1139_v7  ;;  %v602_v13 = vpop.f32.mrb[3].mxu0 }
  0xf8   : > { %v603_v14 = vadd.f32 %v602_v13, %v474_v10 }
  0xf9   : > { %v664_v15 = vpack.c.bf16 %v611_v11, %v608_v5 }
  0xfa   : > { %v663_v16 = vpack.c.bf16 %v603_v14, %v600_v8  ;;  %v1360_v14 = vmov 0.0  }
  0xfb   : > { %v679_v17 = vadd.bf16 %v1560_v12, %v664_v15  ;;  %v1142_v18 = vpop.f32.mrb[4].mxu1  ;;  %1202 = vmatprep.subr.bf16.mxu1 %v1360_v14  ;;  %1218 = vmatprep.mubr.msk.bf16.mxu1 %vm1361_vm3, %v1360_v14  ;;  %v888_v15 = vld [vmem:[#allocation2] sm:$0x1] }
  0xfc   : > { %v678_v19 = vadd.bf16 %v1560_v12, %v663_v16  ;;  %v1160_v20 = vpop.f32.mrb[4].mxu0  ;;  %v487_v21 = vpop.f32.mrb[5].mxu1  ;;  %891 = vperm.xlu0 %1281, %v888_v15   ;;  %v855_v16 = vld [vmem:[%s1665_s6] sm:$0x1] }
  0xfd   : > { %v624_v22 = vadd.f32 %v1160_v20, %v1142_v18  ;;  %v615_v23 = vpop.f32.mrb[5].mxu0  ;;  %v1143_v24 = vpop.f32.mrb[6].mxu1  ;;  %v687_v29 = vmax.bf16 %v1359_v60, %v679_v17  ;;  %v865_v17 = vpack.i.b16 %v855_v16, %v855_v16 }
  0xfe   : > { %v616_v25 = vadd.f32 %v615_v23, %v487_v21  ;;  %v1161_v26 = vpop.f32.mrb[6].mxu0  ;;  %v490_v27 = vpop.f32.mrb[7].mxu1  ;;  %v686_v28 = vmax.bf16 %v1359_v60, %v678_v19 }
  0xff   : > { %v627_v30 = vadd.f32 %v1161_v26, %v1143_v24  ;;  %v618_v31 = vpop.f32.mrb[7].mxu0  ;;  %v870_v20 = vrot.slane %v865_v17, %v1557_v2 }
 0x100   : > { %v619_v32 = vadd.f32 %v618_v31, %v490_v27  ;;  %1186 = vmatprep.mubr.bf16.mxu0 %v686_v28 }
 0x101   : > { %v666_v33 = vpack.c.bf16 %v627_v30, %v624_v22  ;;  %1187 = vmatmul.mubr.bf16.vlgmr.msra.gmra.mrb[16].mxu0 %v687_v29 }
 0x102   : > { %v665_v34 = vpack.c.bf16 %v619_v32, %v616_v25 }
 0x103   : > { %v681_v35 = vadd.bf16 %v1560_v12, %v666_v33  ;;  %v1146_v36 = vpop.f32.mrb[8].mxu1 }
 0x104   : > { %v680_v37 = vadd.bf16 %v1560_v12, %v665_v34  ;;  %v1164_v38 = vpop.f32.mrb[8].mxu0  ;;  %v503_v39 = vpop.f32.mrb[9].mxu1 }
 0x105   : > { %v689_v40 = vmax.bf16 %v1359_v60, %v681_v35  ;;  %v640_v41 = vadd.f32 %v1164_v38, %v1146_v36  ;;  %v631_v42 = vpop.f32.mrb[9].mxu0  ;;  %v1147_v43 = vpop.f32.mrb[10].mxu1 }
 0x106   : > { %v688_v44 = vmax.bf16 %v1359_v60, %v680_v37  ;;  %v632_v45 = vadd.f32 %v631_v42, %v503_v39  ;;  %v1165_v46 = vpop.f32.mrb[10].mxu0  ;;  %v506_v47 = vpop.f32.mrb[11].mxu1 }
 0x107   : > { %v643_v48 = vadd.f32 %v1165_v46, %v1147_v43  ;;  %v634_v49 = vpop.f32.mrb[11].mxu0 }
 0x108   : > { %1190 = vmatprep.mubr.bf16.mxu0 %v688_v44  ;;  %v635_v50 = vadd.f32 %v634_v49, %v506_v47 }
 0x109   : > { %1191 = vmatmul.mubr.bf16.gmra.mrb[20].mxu0 %v689_v40  ;;  %v668_v51 = vpack.c.bf16 %v643_v48, %v640_v41 }
 0x10a   : > { %v667_v52 = vpack.c.bf16 %v635_v50, %v632_v45 }
 0x10b   : > { %v683_v53 = vadd.bf16 %v1560_v12, %v668_v51  ;;  %v1150_v54 = vpop.f32.mrb[12].mxu1 }
 0x10c   : > { %v682_v55 = vadd.bf16 %v1560_v12, %v667_v52  ;;  %v1168_v56 = vpop.f32.mrb[12].mxu0  ;;  %v519_v57 = vpop.f32.mrb[13].mxu1 }
 0x10d   : > { %v691_v58 = vmax.bf16 %v1359_v60, %v683_v53  ;;  %v656_v59 = vadd.f32 %v1168_v56, %v1150_v54  ;;  %v647_v61 = vpop.f32.mrb[13].mxu0  ;;  %v1151_v62 = vpop.f32.mrb[14].mxu1 }
 0x10e   : > { %v690_v63 = vmax.bf16 %v1359_v60, %v682_v55  ;;  %v648_v0 = vadd.f32 %v647_v61, %v519_v57  ;;  %v1169_v1 = vpop.f32.mrb[14].mxu0  ;;  %v522_v3 = vpop.f32.mrb[15].mxu1 }
 0x10f   : > { %v659_v4 = vadd.f32 %v1169_v1, %v1151_v62  ;;  %v650_v5 = vpop.f32.mrb[15].mxu0 }
 0x110   : > { %1194 = vmatprep.mubr.bf16.mxu0 %v690_v63  ;;  %v651_v6 = vadd.f32 %v650_v5, %v522_v3 }
 0x111   : > { %1195 = vmatmul.mubr.bf16.gmra.mrb[24].mxu0 %v691_v58  ;;  %v670_v7 = vpack.c.bf16 %v659_v4, %v656_v59  ;;  %v887_v4 = vld [vmem:[%s1666_s7] sm:$0x1] }
 0x112   : > { %v669_v8 = vpack.c.bf16 %v651_v6, %v648_v0 }
 0x113   : > { %v685_v9 = vadd.bf16 %v1560_v12, %v670_v7 }
 0x114   : > { %v684_v10 = vadd.bf16 %v1560_v12, %v669_v8 }
 0x115   : > { %v693_v11 = vmax.bf16 %v1359_v60, %v685_v9 }
 0x116   : > { %v692_v13 = vmax.bf16 %v1359_v60, %v684_v10 }
 0x118   : > { %1198 = vmatprep.mubr.bf16.mxu0 %v692_v13 }
 0x119   : > { %1199 = vmatmul.mubr.bf16.gmra.mrb[28].mxu0 %v693_v11 }
 0x17b   : > { %v892_v5 = vpop.permute.xlu0 %891 }
 0x17c   : > { %v897_v6 = vrot.slane %v892_v5, %v1557_v2 }
 0x1d4   : > { %v1188_v12 = vpop.f32.mrb[16].mxu0 }
 0x1d5   : > { %v792_v18 = vpop.f32.mrb[17].mxu0 }
 0x1d6   : > { %v1189_v19 = vpop.f32.mrb[18].mxu0 }
 0x1d7   : > { %v857_v21 = vpack.c.bf16 %v1189_v19, %v1188_v12  ;;  %v795_v22 = vpop.f32.mrb[19].mxu0 }
 0x1d8   : > { %v856_v23 = vpack.c.bf16 %v795_v22, %v792_v18 }
 0x1d9   : > { %v872_v28 = vadd.bf16 %v870_v20, %v857_v21 }
 0x1da   : > { %v871_v24 = vadd.bf16 %v870_v20, %v856_v23 }
 0x1db   : > { %v880_v34 = vmax.bf16 %v1359_v60, %v872_v28 }
 0x1dc   : > { %v879_v25 = vmax.bf16 %v1359_v60, %v871_v24  ;;  %v1192_v26 = vpop.f32.mrb[20].mxu0 }
 0x1dd   : > { %v808_v27 = vpop.f32.mrb[21].mxu0  ;;  %v906_v38 = vsel %vm898_vm4, %v880_v34, 0 }
 0x1de   : > { %v1193_v29 = vpop.f32.mrb[22].mxu0  ;;  %v903_v30 = vsel %vm898_vm4, %v879_v25, 0 }
 0x1df   : > { %v859_v31 = vpack.c.bf16 %v1193_v29, %v1192_v26  ;;  %1203 = vmatpush3.bf16.xpose.msra.mxu1 %v903_v30  ;;  %v811_v32 = vpop.f32.mrb[23].mxu0 }
 0x1e0   : > { %v858_v33 = vpack.c.bf16 %v811_v32, %v808_v27  ;;  %1204 = vmatprep.subr.bf16.mxu1 %v1360_v14 }
 0x1e1   : > { %v874_v46 = vadd.bf16 %v870_v20, %v859_v31 }
 0x1e2   : > { %v873_v37 = vadd.bf16 %v870_v20, %v858_v33 }
 0x1e3   : > { %v882_v52 = vmax.bf16 %v1359_v60, %v874_v46 }
 0x1e4   : > { %v1196_v35 = vpop.f32.mrb[24].mxu0  ;;  %v881_v43 = vmax.bf16 %v1359_v60, %v873_v37 }
 0x1e5   : > { %v824_v36 = vpop.f32.mrb[25].mxu0  ;;  %v912_v54 = vsel %vm898_vm4, %v882_v52, 0 }
 0x1e6   : > { %v1197_v39 = vpop.f32.mrb[26].mxu0  ;;  %v909_v47 = vsel %vm898_vm4, %v881_v43, 0 }
 0x1e7   : > { %1205 = vmatpush3.bf16.xpose.msra.mxu1 %v906_v38  ;;  %v861_v40 = vpack.c.bf16 %v1197_v39, %v1196_v35  ;;  %v827_v41 = vpop.f32.mrb[27].mxu0 }
 0x1e8   : > { %1206 = vmatprep.subr.bf16.mxu1 %v1360_v14  ;;  %v860_v42 = vpack.c.bf16 %v827_v41, %v824_v36 }
 0x1e9   : > { %v876_v56 = vadd.bf16 %v870_v20, %v861_v40 }
 0x1ea   : > { %v875_v53 = vadd.bf16 %v870_v20, %v860_v42 }
 0x1eb   : > { %v884_v58 = vmax.bf16 %v1359_v60, %v876_v56 }
 0x1ec   : > { %v1200_v44 = vpop.f32.mrb[28].mxu0  ;;  %v883_v55 = vmax.bf16 %v1359_v60, %v875_v53 }
 0x1ed   : > { %v840_v45 = vpop.f32.mrb[29].mxu0  ;;  %v918_v61 = vsel %vm898_vm4, %v884_v58, 0 }
 0x1ee   : > { %v1201_v48 = vpop.f32.mrb[30].mxu0  ;;  %v915_v57 = vsel %vm898_vm4, %v883_v55, 0 }
 0x1ef   : > { %1207 = vmatpush3.bf16.xpose.msra.mxu1 %v909_v47  ;;  %v863_v49 = vpack.c.bf16 %v1201_v48, %v1200_v44  ;;  %v843_v50 = vpop.f32.mrb[31].mxu0 }
 0x1f0   : > { %1208 = vmatprep.subr.bf16.mxu1 %v1360_v14  ;;  %v862_v51 = vpack.c.bf16 %v843_v50, %v840_v45 }
 0x1f1   : > { %v878_v63 = vadd.bf16 %v870_v20, %v863_v49 }
 0x1f2   : > { %v877_v59 = vadd.bf16 %v870_v20, %v862_v51 }
 0x1f3   : > { %v886_v1 = vmax.bf16 %v1359_v60, %v878_v63 }
 0x1f4   : > { %v885_v62 = vmax.bf16 %v1359_v60, %v877_v59 }
 0x1f5   : > { %v924_v3 = vsel %vm898_vm4, %v886_v1, 0 }
 0x1f6   : > { %v921_v0 = vsel %vm898_vm4, %v885_v62, 0 }
 0x1f7   : > { %1209 = vmatpush3.bf16.xpose.msra.mxu1 %v912_v54 }
 0x1f8   : > { %1210 = vmatprep.subr.bf16.mxu1 %v1360_v14 }
 0x1ff   : > { %1211 = vmatpush3.bf16.xpose.msra.mxu1 %v915_v57 }
 0x200   : > { %1212 = vmatprep.subr.bf16.mxu1 %v1360_v14 }
 0x207   : > { %1213 = vmatpush3.bf16.xpose.msra.mxu1 %v918_v61 }
 0x208   : > { %1214 = vmatprep.subr.bf16.mxu1 %v1360_v14 }
 0x20f   : > { %1215 = vmatpush3.bf16.xpose.msra.mxu1 %v921_v0 }
 0x210   : > { %1216 = vmatprep.subr.bf16.mxu1 %v1360_v14 }
 0x217   : > { %1217 = vmatpush3.bf16.xpose.msra.mxu1 %v924_v3 }
 0x21e   : > { %1219 = vmatmul.mubr.msk.bf16.vlgmr.msra.gmra.mrb[16].mxu1 %vm898_vm4, %v887_v4 }
 0x2f1   : > { %v960_v7 = vpop.f32.mrb[16].mxu1 }
 0x2f2   : > { %v961_v8 = vadd.f32 %v960_v7, %v897_v6  ;;  %v1220_v9 = vpop.f32.mrb[17].mxu1 }
 0x2f3   : > { %v963_v10 = vpop.f32.mrb[18].mxu1 }
 0x2f4   : > { %v1087_v11 = vmul.f32 -1.442695, %v961_v8  ;;  %v1221_v60 = vpop.f32.mrb[19].mxu1 }
 0x2f6   : > { %1291 = vpow2.f32 %v1087_v11 }
 0x300   : > { %v1292_v13 = vpop.eup %1291 }
 0x301   : > { %v969_v14 = vadd.f32 1.0, %v1292_v13 }
 0x303   : > { %1293 = vrcp.f32 %v969_v14 }
 0x30d   : > { %v1294_v2 = vpop.eup %1293 }
 0x30e   : > { %972 = vst [vmem:[%s343_s15] sm:$0x1] %v1294_v2 }
 0x30f   : > { %1308 = shalt.err (!%p1305_p3)
}
 0x310   : > { %s1309_s26 = scalar_lea.hbm %s1617_s17, 16  ;;  %s1313_s10 = scalar_lea.hbm %s1668_s9, 32 }
 0x311   : > { %p1310_p4 = scmp.ne.s32.totalorder %s1617_s17, %s1309_s26  ;;  %p1314_p9 = scmp.lt.u32.totalorder %s1617_s17, %s1668_s9 }
 0x312   : > { %p1315_p10 = scmp.lt.u32.totalorder %s1313_s10, %s1309_s26  ;;  %p1317_p12 = scmp.lt.u32.totalorder %s1309_s26, %s1617_s17 }
 0x313   : > { %p1311_p7 = pnand %p1310_p4, %p1451_p5 }
 0x314   : > { %p1316_p11 = por %p1315_p10, %p1314_p9 }
 0x315   : > { %p1312_p8 = pneg %p1311_p7 }
 0x316   : > { %p1318_p13 = por %p1317_p12, %p1316_p11 }
 0x318   : > { %p1319_p0 = pnand %p1318_p13, %p1312_p8 }
 0x31a   : > { %1322 = shalt.err (!%p1319_p0)
}
 0x31b   : > { %1239 = dma.vmem_to_hbm [thread:$0]  (%p1451_p5), %s1619_s8, 16, %s1617_s17, %s974_s22  }
 0x31c PF: > { %p1245_p1 = scmp.ge.s32.totalorder %s1357_s14, 2  ;;  %s998_s23 = sand.u32 1, %s1345_s11  }
 0x31d   : > { %s999_s24 = scalar_lea.sflag [#allocation4], %s998_s23 }
 0x31e   : > { %p1242_p2 = pnand %p1245_p1, %p1455_p6 }
 0x320   : > { %1340 = dma.done.wait (!%p1242_p2), %s999_s24, 16  }
 0x321   : > { %1342 = vsyncadd (!%p1242_p2), %s999_s24, 4294967280  ;;  %p21_p3 = scmp.ge.s32.totalorder %s1439_s16, 4   ;;  %s1671_s11 = smov %s1349_s12 }
 0x322   : > { %s1672_s12 = smov %s1353_s13  ;;  %s1673_s13 = smov %s1449_s19 }
 0x323   : > { %s1674_s14 = smov %s1439_s16  ;;  %23 = sbr.rel (!%p21_p3) target bundleno = 6 (0x6), region = 94 }
 0x32a   :  { %1003 = vsyncpa [#allocation4], 1 }
 0x32b   :  { %1005 = vsyncpa [#allocation4 + $0x1], 1 }

</bundles_post_ra>
